<compile_context>
chip_gen: v6e
topology: v6e:2x2x1
jax: 0.10.0
libtpu: 0.0.40
codegen_flags: <defaults>
</compile_context>

<pallas_src>
import functools

import jax
import jax.numpy as jnp
from jax.experimental import pallas as pl
from jax.experimental.pallas import tpu as pltpu

LANE = 128      # f32 lane width (last dim)
SUBLANE = 8     # f32 sublane width (second-to-last dim)


def _round_up(x, m):
    return ((x + m - 1) // m) * m


def _make_fused_kernel(num_layers):
    """Fused chain: x -> tanh(x@W0+b0) -> ... -> tanh(x@W_{L-1}+b_{L-1}).

    refs = (x_ref, w0_ref, b0_ref, ..., w_{L-1}_ref, b_{L-1}_ref, o_ref).
    The Python loop is unrolled at trace time; intermediates never leave
    vregs/VMEM and only the final activation is stored.
    """
    def kernel(*refs):
        x_ref = refs[0]
        o_ref = refs[-1]
        x = x_ref[...]
        for l in range(num_layers):
            w = refs[1 + 2 * l][...]
            b = refs[2 + 2 * l][...]          # (1, Np) — read once per layer
            y = jnp.dot(x, w, preferred_element_type=jnp.float32)  # MXU
            y = y + b                          # single broadcast add (VPU)
            x = jnp.tanh(y)                    # EUP, f32 tail (v5e-safe)
        o_ref[...] = x.astype(o_ref.dtype)
    return kernel


def init_autoencoder_params(shape, key, dtype=jnp.float32):
    """Deterministic params matching nn.Linear shapes (weights transposed)."""
    layer_dims = [(shape[i], shape[i + 1]) for i in range(len(shape) - 1)]
    params = []
    for (fan_in, fan_out) in layer_dims:
        key, kw, kb = jax.random.split(key, 3)
        bound = 1.0 / (fan_in ** 0.5)          # PyTorch Linear default range
        w = jax.random.uniform(kw, (fan_in, fan_out), dtype, -bound, bound)
        b = jax.random.uniform(kb, (1, fan_out), dtype, -bound, bound)
        params.append((w, b))
    return params


def pad_params(params):
    """Zero-pad every (w, b) so all feature dims are multiples of 128."""
    padded = []
    for (w, b) in params:
        k, n = w.shape
        kp, np_ = _round_up(k, LANE), _round_up(n, LANE)
        wp = jnp.zeros((kp, np_), w.dtype).at[:k, :n].set(w)
        bp = jnp.zeros((1, np_), b.dtype).at[:, :n].set(b)
        padded.append((wp, bp))
    return padded


@functools.partial(jax.jit, static_argnames=("out_features", "block_m"))
def autoencoder_forward(x, padded_params, out_features, block_m=512):
    """Full autoencoder forward as one fused pallas_call.

    x: (M, K) unpadded.  padded_params: list of ((Kp, Np), (1, Np)) arrays.
    Returns (M, out_features).
    """
    M, K = x.shape
    Kp = padded_params[0][0].shape[0]
    Np = padded_params[-1][0].shape[1]
    Mp = _round_up(M, SUBLANE)

    # Lane/sublane-dense input slab (padding rows/cols are zero).
    x_pad = jnp.zeros((Mp, Kp), x.dtype).at[:M, :K].set(x)

    bm = min(Mp, block_m)
    grid = (pl.cdiv(Mp, bm),)

    flat_inputs = [x_pad]
    in_specs = [pl.BlockSpec((bm, Kp), lambda i: (i, 0))]
    flops = 0
    transcendentals = 0
    bytes_accessed = Mp * Kp * 4 + Mp * Np * 4
    for (w, b) in padded_params:
        flat_inputs += [w, b]
        in_specs += [
            pl.BlockSpec(w.shape, lambda i: (0, 0)),   # weights resident
            pl.BlockSpec(b.shape, lambda i: (0, 0)),
        ]
        flops += 2 * Mp * w.shape[0] * w.shape[1]
        transcendentals += Mp * w.shape[1]
        bytes_accessed += (w.size + b.size) * 4

    out_pad = pl.pallas_call(
        _make_fused_kernel(len(padded_params)),
        out_shape=jax.ShapeDtypeStruct((Mp, Np), x.dtype),
        grid=grid,
        in_specs=in_specs,
        out_specs=pl.BlockSpec((bm, Np), lambda i: (i, 0)),
        compiler_params=pltpu.CompilerParams(
            dimension_semantics=("parallel",),         # batch tiles independent
            vmem_limit_bytes=32 * 1024 * 1024,         # explicit budget (v7x-safe)
        ),
        cost_estimate=pl.CostEstimate(
            flops=flops,
            transcendentals=transcendentals,
            bytes_accessed=bytes_accessed,
        ),
    )(*flat_inputs)

    # Slice padded rows/columns back to the logical output.
    return out_pad[:M, :out_features]


def autoencoder_reference(x, params):
    # Pure-JAX reference (mirrors the PyTorch forward), unpadded params.
    for (w, b) in params:
        x = jnp.tanh(x @ w + b)
    return x


if __name__ == "__main__":
    # Autoencoder shape: 32 -> 16 -> 8 -> 16 -> 32  (bottleneck = 8)
    shape = (32, 16, 8, 16, 32)
    batch = 2

    key = jax.random.PRNGKey(0)
    key, kx = jax.random.split(key)
    x = jax.random.normal(kx, (batch, shape[0]), jnp.float32)

    params = init_autoencoder_params(shape, key)
    padded_params = pad_params(params)     # padded once, outside the forward

    out = autoencoder_forward(x, padded_params, out_features=shape[-1])
    out = jax.block_until_ready(out)

    ref = autoencoder_reference(x, params)
    assert out.shape == (batch, shape[-1])
    assert jnp.allclose(out, ref, atol=1e-5, rtol=1e-5)

    print("KERNEL_OK")
</pallas_src>

<mosaic_0001>
module attributes {stable_mosaic.version = 11 : i64} {
  func.func @kernel(%arg0: i32, %arg1: memref<8x128xf32, #tpu.memory_space<vmem>>, %arg2: memref<128x128xf32, #tpu.memory_space<vmem>>, %arg3: memref<1x128xf32, #tpu.memory_space<vmem>>, %arg4: memref<128x128xf32, #tpu.memory_space<vmem>>, %arg5: memref<1x128xf32, #tpu.memory_space<vmem>>, %arg6: memref<128x128xf32, #tpu.memory_space<vmem>>, %arg7: memref<1x128xf32, #tpu.memory_space<vmem>>, %arg8: memref<128x128xf32, #tpu.memory_space<vmem>>, %arg9: memref<1x128xf32, #tpu.memory_space<vmem>>, %arg10: memref<8x128xf32, #tpu.memory_space<vmem>>) attributes {dimension_semantics = [#tpu.dimension_semantics<parallel>], iteration_bounds = array<i64: 1>, scalar_prefetch = 0 : i64, scratch_operands = 0 : i64, tpu.core_type = #tpu.core_type<tc>, window_params = [{transform_indices = @transform_0, window_bounds = array<i64: 8, 128>}, {pipeline_mode = #tpu.pipeline_mode<synchronous>, transform_indices = @transform_1, window_bounds = array<i64: 128, 128>}, {pipeline_mode = #tpu.pipeline_mode<synchronous>, transform_indices = @transform_2, window_bounds = array<i64: 1, 128>}, {pipeline_mode = #tpu.pipeline_mode<synchronous>, transform_indices = @transform_3, window_bounds = array<i64: 128, 128>}, {pipeline_mode = #tpu.pipeline_mode<synchronous>, transform_indices = @transform_4, window_bounds = array<i64: 1, 128>}, {pipeline_mode = #tpu.pipeline_mode<synchronous>, transform_indices = @transform_5, window_bounds = array<i64: 128, 128>}, {pipeline_mode = #tpu.pipeline_mode<synchronous>, transform_indices = @transform_6, window_bounds = array<i64: 1, 128>}, {pipeline_mode = #tpu.pipeline_mode<synchronous>, transform_indices = @transform_7, window_bounds = array<i64: 128, 128>}, {pipeline_mode = #tpu.pipeline_mode<synchronous>, transform_indices = @transform_8, window_bounds = array<i64: 1, 128>}, {transform_indices = @transform_9, window_bounds = array<i64: 8, 128>}]} {
    %c0 = arith.constant 0 : index
    %c0_0 = arith.constant 0 : index
    %0 = vector.load %arg1[%c0, %c0_0] : memref<8x128xf32, #tpu.memory_space<vmem>>, vector<8x128xf32>
    %c0_1 = arith.constant 0 : index
    %c0_2 = arith.constant 0 : index
    %1 = vector.load %arg2[%c0_1, %c0_2] : memref<128x128xf32, #tpu.memory_space<vmem>>, vector<128x128xf32>
    %c0_3 = arith.constant 0 : index
    %c0_4 = arith.constant 0 : index
    %2 = vector.load %arg3[%c0_3, %c0_4] : memref<1x128xf32, #tpu.memory_space<vmem>>, vector<1x128xf32>
    %cst = arith.constant dense<0.000000e+00> : vector<8x128xf32>
    %3 = tpu.matmul %0, %1, %cst {dimension_numbers = #tpu.dot_dimension_numbers<[1], [0], [0], [1], [0, 0, 1, 1], [], []>} : vector<8x128xf32>, vector<128x128xf32>, vector<8x128xf32> -> vector<8x128xf32>
    %4 = vector.broadcast %2 : vector<1x128xf32> to vector<8x128xf32>
    %5 = arith.addf %3, %4 : vector<8x128xf32>
    %6 = math.tanh %5 : vector<8x128xf32>
    %c0_5 = arith.constant 0 : index
    %c0_6 = arith.constant 0 : index
    %7 = vector.load %arg4[%c0_5, %c0_6] : memref<128x128xf32, #tpu.memory_space<vmem>>, vector<128x128xf32>
    %c0_7 = arith.constant 0 : index
    %c0_8 = arith.constant 0 : index
    %8 = vector.load %arg5[%c0_7, %c0_8] : memref<1x128xf32, #tpu.memory_space<vmem>>, vector<1x128xf32>
    %cst_9 = arith.constant dense<0.000000e+00> : vector<8x128xf32>
    %9 = tpu.matmul %6, %7, %cst_9 {dimension_numbers = #tpu.dot_dimension_numbers<[1], [0], [0], [1], [0, 0, 1, 1], [], []>} : vector<8x128xf32>, vector<128x128xf32>, vector<8x128xf32> -> vector<8x128xf32>
    %10 = vector.broadcast %8 : vector<1x128xf32> to vector<8x128xf32>
    %11 = arith.addf %9, %10 : vector<8x128xf32>
    %12 = math.tanh %11 : vector<8x128xf32>
    %c0_10 = arith.constant 0 : index
    %c0_11 = arith.constant 0 : index
    %13 = vector.load %arg6[%c0_10, %c0_11] : memref<128x128xf32, #tpu.memory_space<vmem>>, vector<128x128xf32>
    %c0_12 = arith.constant 0 : index
    %c0_13 = arith.constant 0 : index
    %14 = vector.load %arg7[%c0_12, %c0_13] : memref<1x128xf32, #tpu.memory_space<vmem>>, vector<1x128xf32>
    %cst_14 = arith.constant dense<0.000000e+00> : vector<8x128xf32>
    %15 = tpu.matmul %12, %13, %cst_14 {dimension_numbers = #tpu.dot_dimension_numbers<[1], [0], [0], [1], [0, 0, 1, 1], [], []>} : vector<8x128xf32>, vector<128x128xf32>, vector<8x128xf32> -> vector<8x128xf32>
    %16 = vector.broadcast %14 : vector<1x128xf32> to vector<8x128xf32>
    %17 = arith.addf %15, %16 : vector<8x128xf32>
    %18 = math.tanh %17 : vector<8x128xf32>
    %c0_15 = arith.constant 0 : index
    %c0_16 = arith.constant 0 : index
    %19 = vector.load %arg8[%c0_15, %c0_16] : memref<128x128xf32, #tpu.memory_space<vmem>>, vector<128x128xf32>
    %c0_17 = arith.constant 0 : index
    %c0_18 = arith.constant 0 : index
    %20 = vector.load %arg9[%c0_17, %c0_18] : memref<1x128xf32, #tpu.memory_space<vmem>>, vector<1x128xf32>
    %cst_19 = arith.constant dense<0.000000e+00> : vector<8x128xf32>
    %21 = tpu.matmul %18, %19, %cst_19 {dimension_numbers = #tpu.dot_dimension_numbers<[1], [0], [0], [1], [0, 0, 1, 1], [], []>} : vector<8x128xf32>, vector<128x128xf32>, vector<8x128xf32> -> vector<8x128xf32>
    %22 = vector.broadcast %20 : vector<1x128xf32> to vector<8x128xf32>
    %23 = arith.addf %21, %22 : vector<8x128xf32>
    %24 = math.tanh %23 : vector<8x128xf32>
    %c0_20 = arith.constant 0 : index
    %c0_21 = arith.constant 0 : index
    %25 = vector.load %arg10[%c0_20, %c0_21] : memref<8x128xf32, #tpu.memory_space<vmem>>, vector<8x128xf32>
    tpu.vector_store %arg10[%c0_20, %c0_21], %24 {strides = array<i32>} : memref<8x128xf32, #tpu.memory_space<vmem>>, vector<8x128xf32>,
    return
  }
  func.func @transform_0(%arg0: i32) -> (i32, i32) {
    %c0_i32 = arith.constant 0 : i32
    %c0_i32_0 = arith.constant 0 : i32
    return %arg0, %c0_i32 : i32, i32
  }
  func.func @transform_1(%arg0: i32) -> (i32, i32) {
    %c0_i32 = arith.constant 0 : i32
    %c0_i32_0 = arith.constant 0 : i32
    %c0_i32_1 = arith.constant 0 : i32
    return %c0_i32, %c0_i32_0 : i32, i32
  }
  func.func @transform_2(%arg0: i32) -> (i32, i32) {
    %c0_i32 = arith.constant 0 : i32
    %c0_i32_0 = arith.constant 0 : i32
    %c0_i32_1 = arith.constant 0 : i32
    return %c0_i32, %c0_i32_0 : i32, i32
  }
  func.func @transform_3(%arg0: i32) -> (i32, i32) {
    %c0_i32 = arith.constant 0 : i32
    %c0_i32_0 = arith.constant 0 : i32
    %c0_i32_1 = arith.constant 0 : i32
    return %c0_i32, %c0_i32_0 : i32, i32
  }
  func.func @transform_4(%arg0: i32) -> (i32, i32) {
    %c0_i32 = arith.constant 0 : i32
    %c0_i32_0 = arith.constant 0 : i32
    %c0_i32_1 = arith.constant 0 : i32
    return %c0_i32, %c0_i32_0 : i32, i32
  }
  func.func @transform_5(%arg0: i32) -> (i32, i32) {
    %c0_i32 = arith.constant 0 : i32
    %c0_i32_0 = arith.constant 0 : i32
    %c0_i32_1 = arith.constant 0 : i32
    return %c0_i32, %c0_i32_0 : i32, i32
  }
  func.func @transform_6(%arg0: i32) -> (i32, i32) {
    %c0_i32 = arith.constant 0 : i32
    %c0_i32_0 = arith.constant 0 : i32
    %c0_i32_1 = arith.constant 0 : i32
    return %c0_i32, %c0_i32_0 : i32, i32
  }
  func.func @transform_7(%arg0: i32) -> (i32, i32) {
    %c0_i32 = arith.constant 0 : i32
    %c0_i32_0 = arith.constant 0 : i32
    %c0_i32_1 = arith.constant 0 : i32
    return %c0_i32, %c0_i32_0 : i32, i32
  }
  func.func @transform_8(%arg0: i32) -> (i32, i32) {
    %c0_i32 = arith.constant 0 : i32
    %c0_i32_0 = arith.constant 0 : i32
    %c0_i32_1 = arith.constant 0 : i32
    return %c0_i32, %c0_i32_0 : i32, i32
  }
  func.func @transform_9(%arg0: i32) -> (i32, i32) {
    %c0_i32 = arith.constant 0 : i32
    %c0_i32_0 = arith.constant 0 : i32
    return %arg0, %c0_i32 : i32, i32
  }
}

</mosaic_0001>

<bundles_post_ra>
// kernel: autoencoder_forward.1
= control target key start
LH: loop header
LB: loop body
LE: loop exit
PB: predicated region body
PF: predicated region fallthrough
CT: control target
= control target key end

     0   :  { %14 = vsyncpa [#allocation3], 0  ;;  %s958_s0 = inlined_call_operand.vmem [shape: f32[8,128], index: 0, kind: input, shape index: {}]   ;;  %s959_s1 = inlined_call_operand.hbm [shape: f32[128,128], index: 1, kind: input, shape index: {}]   ;;  %s960_s2 = inlined_call_operand.vmem [shape: f32[1,128], index: 2, kind: input, shape index: {}]   ;;  %s961_s3 = inlined_call_operand.hbm [shape: f32[128,128], index: 3, kind: input, shape index: {}]   ;;  %s962_s4 = inlined_call_operand.vmem [shape: f32[1,128], index: 4, kind: input, shape index: {}]   ;;  %s963_s5 = inlined_call_operand.hbm [shape: f32[128,128], index: 5, kind: input, shape index: {}]   ;;  %s964_s6 = inlined_call_operand.vmem [shape: f32[1,128], index: 6, kind: input, shape index: {}]   ;;  %s965_s7 = inlined_call_operand.hbm [shape: f32[128,128], index: 7, kind: input, shape index: {}]   ;;  %s966_s8 = inlined_call_operand.vmem [shape: f32[1,128], index: 8, kind: input, shape index: {}]   ;;  %s967_s9 = inlined_call_operand.vmem [shape: f32[8,128], index: 9, kind: output, shape index: {}]  }
   0x1   :  { %15 = vsyncpa [#allocation5], 0 }
   0x2   :  { %16 = vsyncpa [#allocation8], 0  ;;  %s786_s30 = smov [#allocation4]   ;;  %s787_s11 = smov [#allocation2]  }
   0x3   :  { %s38_s10 = sshll.u32 %s786_s30, 4  ;;  %s24_s12 = sshll.u32 %s787_s11, 4  ;;  %s39_s10 = int_to_ptr.vmem [resolvable:$true] %s38_s10  ;;  %s25_s12 = int_to_ptr.vmem [resolvable:$true] %s24_s12 }
   0x4   :  { %s708_s13 = scalar_lea.vmem %s39_s10, 2048  ;;  %p713_p1 = scmp.lt.s32.totalorder %s39_s10, %s39_s10 }
   0x5   :  { %p709_p0 = scmp.ne.s32.totalorder %s39_s10, %s708_s13  ;;  %p714_p2 = scmp.lt.s32.totalorder %s708_s13, %s708_s13 }
   0x7   :  { %p715_p3 = por %p714_p2, %p713_p1 }
   0x9   :  { %p716_p4 = pnand %p715_p3, %p709_p0 }
   0xb   :  { %719 = shalt.err (!%p716_p4)
}
   0xc   :  { %s788_s14 = smov 128   ;;  %s789_s15 = smov 8  }
   0xd   :  { %44 = dma.hbm_to_vmem [thread:$0]  %s961_s3, 2048, %s39_s10, [#allocation5], %s788_s14, %s788_s14, %s789_s15  }
   0xe   :  { %s728_s18 = scalar_lea.vmem %s25_s12, 2048  ;;  %p733_p6 = scmp.lt.s32.totalorder %s25_s12, %s25_s12 }
   0xf   :  { %p729_p5 = scmp.ne.s32.totalorder %s25_s12, %s728_s18  ;;  %p734_p7 = scmp.lt.s32.totalorder %s728_s18, %s728_s18 }
  0x11   :  { %p735_p8 = por %p734_p7, %p733_p6 }
  0x13   :  { %p736_p9 = pnand %p735_p8, %p729_p5 }
  0x15   :  { %739 = shalt.err (!%p736_p9)
}
  0x16   :  { %30 = dma.hbm_to_vmem [thread:$0]  %s959_s1, 2048, %s25_s12, [#allocation3], %s788_s14, %s788_s14, %s789_s15  }
  0x17   :  { %s790_s21 = smov [#allocation6]   ;;  %s791_s23 = smov [#allocation7]  }
  0x18   :  { %s52_s22 = sshll.u32 %s790_s21, 4  ;;  %s66_s24 = sshll.u32 %s791_s23, 4  ;;  %s53_s22 = int_to_ptr.vmem [resolvable:$true] %s52_s22  ;;  %s67_s24 = int_to_ptr.vmem [resolvable:$true] %s66_s24 }
  0x19   :  { %s748_s3 = scalar_lea.vmem %s53_s22, 2048  ;;  %p753_p11 = scmp.lt.s32.totalorder %s53_s22, %s53_s22 }
  0x1a   :  { %p749_p10 = scmp.ne.s32.totalorder %s53_s22, %s748_s3  ;;  %p754_p12 = scmp.lt.s32.totalorder %s748_s3, %s748_s3 }
  0x1c   :  { %p755_p13 = por %p754_p12, %p753_p11 }
  0x1e   :  { %p756_p0 = pnand %p755_p13, %p749_p10 }
  0x20   :  { %759 = shalt.err (!%p756_p0)
}
  0x21   :  { %58 = dma.hbm_to_vmem [thread:$0]  %s963_s5, 2048, %s53_s22, [#allocation5], %s788_s14, %s788_s14, %s789_s15  }
  0x22   :  { %s768_s1 = scalar_lea.vmem %s67_s24, 2048  ;;  %p773_p2 = scmp.lt.s32.totalorder %s67_s24, %s67_s24 }
  0x23   :  { %p769_p1 = scmp.ne.s32.totalorder %s67_s24, %s768_s1  ;;  %p774_p3 = scmp.lt.s32.totalorder %s768_s1, %s768_s1 }
  0x25   :  { %p775_p4 = por %p774_p3, %p773_p2 }
  0x27   :  { %p776_p5 = pnand %p775_p4, %p769_p1 }
  0x29   :  { %779 = shalt.err (!%p776_p5)
}
  0x2a   :  { %72 = dma.hbm_to_vmem [thread:$0]  %s965_s7, 2048, %s67_s24, [#allocation8], %s788_s14, %s788_s14, %s789_s15  }
  0x2b   :  { %780 = dma.done.wait [#allocation3], 2048  }
  0x2c   :  { %781 = vsyncadd [#allocation3], 4294965248 }
  0x2d   :  { %782 = dma.done.wait [#allocation5], 4096  }
  0x2e   :  { %783 = vsyncadd [#allocation5], 4294963200 }
  0x2f   :  { %784 = dma.done.wait [#allocation8], 2048  }
  0x30   :  { %785 = vsyncadd [#allocation8], 4294965248  ;;  %v792_v0 = vmov 0.0   ;;  %vm793_vm0 = vmmov 0   ;;  %v103_v1 = vld [vmem:[#allocation2 + $0x78] sm:$0xff]  ;;  %v102_v2 = vld [vmem:[#allocation2 + $0x70] sm:$0xff] }
  0x31   :  { %544 = vmatprep.subr.mxu0 %v792_v0  ;;  %576 = vmatprep.mubr.msk.f32.mxu0 %vm793_vm0, %v792_v0  ;;  %v101_v3 = vld [vmem:[#allocation2 + $0x68] sm:$0xff]  ;;  %v100_v4 = vld [vmem:[#allocation2 + $0x60] sm:$0xff]  ;;  %v197_v5 = vld [vmem:[#allocation4 + $0x78] sm:$0xff] }
  0x32   :  { %579 = vmatprep.subr.mxu1 %v792_v0  ;;  %611 = vmatprep.mubr.msk.f32.mxu1 %vm793_vm0, %v792_v0  ;;  %v99_v6 = vld [vmem:[#allocation2 + $0x58] sm:$0xff]  ;;  %v196_v7 = vld [vmem:[#allocation4 + $0x70] sm:$0xff]  ;;  %v195_v8 = vld [vmem:[#allocation4 + $0x68] sm:$0xff] }
  0x33   :  { %545 = vmatpush3.msra.mxu0 %v103_v1  ;;  %580 = vmatpush3.msra.mxu1 %v197_v5  ;;  %v98_v9 = vld [vmem:[#allocation2 + $0x50] sm:$0xff]  ;;  %v194_v10 = vld [vmem:[#allocation4 + $0x60] sm:$0xff]  ;;  %v97_v11 = vld [vmem:[#allocation2 + $0x48] sm:$0xff] }
  0x34   :  { %546 = vmatprep.subr.mxu0 %v792_v0  ;;  %581 = vmatprep.subr.mxu1 %v792_v0  ;;  %v193_v12 = vld [vmem:[#allocation4 + $0x58] sm:$0xff]  ;;  %v96_v13 = vld [vmem:[#allocation2 + $0x40] sm:$0xff]  ;;  %v192_v14 = vld [vmem:[#allocation4 + $0x50] sm:$0xff] }
  0x35   :  { %547 = vmatpush3.msra.mxu0 %v102_v2  ;;  %582 = vmatpush3.msra.mxu1 %v196_v7  ;;  %v95_v15 = vld [vmem:[#allocation2 + $0x38] sm:$0xff]  ;;  %v191_v16 = vld [vmem:[#allocation4 + $0x48] sm:$0xff]  ;;  %v94_v17 = vld [vmem:[#allocation2 + $0x30] sm:$0xff] }
  0x36   :  { %548 = vmatprep.subr.mxu0 %v792_v0  ;;  %583 = vmatprep.subr.mxu1 %v792_v0  ;;  %v93_v18 = vld [vmem:[#allocation2 + $0x28] sm:$0xff]  ;;  %v92_v19 = vld [vmem:[#allocation2 + $0x20] sm:$0xff]  ;;  %v91_v20 = vld [vmem:[#allocation2 + $0x18] sm:$0xff] }
  0x37   :  { %549 = vmatpush3.msra.mxu0 %v101_v3  ;;  %584 = vmatpush3.msra.mxu1 %v195_v8  ;;  %v90_v21 = vld [vmem:[#allocation2 + $0x10] sm:$0xff]  ;;  %v89_v22 = vld [vmem:[#allocation2 + $0x8] sm:$0xff]  ;;  %v88_v23 = vld [vmem:[#allocation2] sm:$0xff] }
  0x38   :  { %550 = vmatprep.subr.mxu0 %v792_v0  ;;  %585 = vmatprep.subr.mxu1 %v792_v0  ;;  %v87_v24 = vld [vmem:[%s958_s0] sm:$0xff]  ;;  %v189_v26 = vld [vmem:[#allocation4 + $0x38] sm:$0xff]  ;;  %v188_v27 = vld [vmem:[#allocation4 + $0x30] sm:$0xff] }
  0x39   :  { %551 = vmatpush3.msra.mxu0 %v100_v4  ;;  %586 = vmatpush3.msra.mxu1 %v194_v10  ;;  %v190_v25 = vld [vmem:[#allocation4 + $0x40] sm:$0xff]  ;;  %v187_v28 = vld [vmem:[#allocation4 + $0x28] sm:$0xff]  ;;  %v185_v30 = vld [vmem:[#allocation4 + $0x18] sm:$0xff] }
  0x3a   :  { %552 = vmatprep.subr.mxu0 %v792_v0  ;;  %587 = vmatprep.subr.mxu1 %v792_v0  ;;  %v186_v29 = vld [vmem:[#allocation4 + $0x20] sm:$0xff]  ;;  %v184_v31 = vld [vmem:[#allocation4 + $0x10] sm:$0xff]  ;;  %v183_v32 = vld [vmem:[#allocation4 + $0x8] sm:$0xff] }
  0x3b   :  { %553 = vmatpush3.msra.mxu0 %v99_v6  ;;  %588 = vmatpush3.msra.mxu1 %v193_v12  ;;  %v182_v33 = vld [vmem:[#allocation4] sm:$0xff]  ;;  %v291_v34 = vld [vmem:[#allocation6 + $0x78] sm:$0xff]  ;;  %v290_v35 = vld [vmem:[#allocation6 + $0x70] sm:$0xff] }
  0x3c   :  { %554 = vmatprep.subr.mxu0 %v792_v0  ;;  %589 = vmatprep.subr.mxu1 %v792_v0  ;;  %v289_v36 = vld [vmem:[#allocation6 + $0x68] sm:$0xff]  ;;  %v288_v37 = vld [vmem:[#allocation6 + $0x60] sm:$0xff]  ;;  %v287_v38 = vld [vmem:[#allocation6 + $0x58] sm:$0xff] }
  0x3d   :  { %555 = vmatpush3.msra.mxu0 %v98_v9  ;;  %590 = vmatpush3.msra.mxu1 %v192_v14  ;;  %v286_v39 = vld [vmem:[#allocation6 + $0x50] sm:$0xff]  ;;  %v285_v40 = vld [vmem:[#allocation6 + $0x48] sm:$0xff]  ;;  %v472_v41 = vld [vmem:[%s960_s2] ss:$0 sm:$0xff] }
  0x3e   :  { %556 = vmatprep.subr.mxu0 %v792_v0  ;;  %591 = vmatprep.subr.mxu1 %v792_v0  ;;  %v284_v46 = vld [vmem:[#allocation6 + $0x40] sm:$0xff]  ;;  %v283_v47 = vld [vmem:[#allocation6 + $0x38] sm:$0xff]  ;;  %v282_v48 = vld [vmem:[#allocation6 + $0x30] sm:$0xff] }
  0x3f   :  { %557 = vmatpush3.msra.mxu0 %v97_v11  ;;  %592 = vmatpush3.msra.mxu1 %v191_v16  ;;  %v281_v49 = vld [vmem:[#allocation6 + $0x28] sm:$0xff]  ;;  %v280_v50 = vld [vmem:[#allocation6 + $0x20] sm:$0xff]  ;;  %v279_v51 = vld [vmem:[#allocation6 + $0x18] sm:$0xff] }
  0x40   :  { %558 = vmatprep.subr.mxu0 %v792_v0  ;;  %593 = vmatprep.subr.mxu1 %v792_v0  ;;  %v278_v52 = vld [vmem:[#allocation6 + $0x10] sm:$0xff]  ;;  %v277_v53 = vld [vmem:[#allocation6 + $0x8] sm:$0xff]  ;;  %v276_v54 = vld [vmem:[#allocation6] sm:$0xff] }
  0x41   :  { %559 = vmatpush3.msra.mxu0 %v96_v13  ;;  %594 = vmatpush3.msra.mxu1 %v190_v25  ;;  %v385_v55 = vld [vmem:[#allocation7 + $0x78] sm:$0xff]  ;;  %v384_v56 = vld [vmem:[#allocation7 + $0x70] sm:$0xff]  ;;  %v383_v57 = vld [vmem:[#allocation7 + $0x68] sm:$0xff] }
  0x42   :  { %560 = vmatprep.subr.mxu0 %v792_v0  ;;  %595 = vmatprep.subr.mxu1 %v792_v0  ;;  %v382_v58 = vld [vmem:[#allocation7 + $0x60] sm:$0xff]  ;;  %v381_v59 = vld [vmem:[#allocation7 + $0x58] sm:$0xff]  ;;  %v380_v60 = vld [vmem:[#allocation7 + $0x50] sm:$0xff] }
  0x43   :  { %561 = vmatpush3.msra.mxu0 %v95_v15  ;;  %596 = vmatpush3.msra.mxu1 %v189_v26  ;;  %v379_v61 = vld [vmem:[#allocation7 + $0x48] sm:$0xff]  ;;  %v473_v62 = vld [vmem:[%s962_s4] ss:$0 sm:$0xff]  ;;  %v377_v5 = vld [vmem:[#allocation7 + $0x38] sm:$0xff] }
  0x44   :  { %562 = vmatprep.subr.mxu0 %v792_v0  ;;  %597 = vmatprep.subr.mxu1 %v792_v0  ;;  %v378_v4 = vld [vmem:[#allocation7 + $0x40] sm:$0xff]  ;;  %v376_v6 = vld [vmem:[#allocation7 + $0x30] sm:$0xff]  ;;  %v375_v7 = vld [vmem:[#allocation7 + $0x28] sm:$0xff] }
  0x45   :  { %563 = vmatpush3.msra.mxu0 %v94_v17  ;;  %598 = vmatpush3.msra.mxu1 %v188_v27  ;;  %v374_v8 = vld [vmem:[#allocation7 + $0x20] sm:$0xff]  ;;  %v373_v9 = vld [vmem:[#allocation7 + $0x18] sm:$0xff]  ;;  %v372_v10 = vld [vmem:[#allocation7 + $0x10] sm:$0xff] }
  0x46   :  { %564 = vmatprep.subr.mxu0 %v792_v0  ;;  %599 = vmatprep.subr.mxu1 %v792_v0  ;;  %v371_v11 = vld [vmem:[#allocation7 + $0x8] sm:$0xff]  ;;  %v370_v12 = vld [vmem:[#allocation7] sm:$0xff] }
  0x47   :  { %565 = vmatpush3.msra.mxu0 %v93_v18  ;;  %600 = vmatpush3.msra.mxu1 %v187_v28  ;;  %v474_v13 = vld [vmem:[%s964_s6] ss:$0 sm:$0xff] }
  0x48   :  { %566 = vmatprep.subr.mxu0 %v792_v0  ;;  %601 = vmatprep.subr.mxu1 %v792_v0  ;;  %v475_v18 = vld [vmem:[%s966_s8] ss:$0 sm:$0xff] }
  0x49   :  { %567 = vmatpush3.msra.mxu0 %v92_v19  ;;  %602 = vmatpush3.msra.mxu1 %v186_v29 }
  0x4a   :  { %568 = vmatprep.subr.mxu0 %v792_v0  ;;  %603 = vmatprep.subr.mxu1 %v792_v0 }
  0x4b   :  { %569 = vmatpush3.msra.mxu0 %v91_v20  ;;  %604 = vmatpush3.msra.mxu1 %v185_v30 }
  0x4c   :  { %570 = vmatprep.subr.mxu0 %v792_v0  ;;  %605 = vmatprep.subr.mxu1 %v792_v0 }
  0x4d   :  { %571 = vmatpush3.msra.mxu0 %v90_v21  ;;  %606 = vmatpush3.msra.mxu1 %v184_v31 }
  0x4e   :  { %572 = vmatprep.subr.mxu0 %v792_v0  ;;  %607 = vmatprep.subr.mxu1 %v792_v0 }
  0x4f   :  { %573 = vmatpush3.msra.mxu0 %v89_v22  ;;  %608 = vmatpush3.msra.mxu1 %v183_v32 }
  0x50   :  { %574 = vmatprep.subr.mxu0 %v792_v0  ;;  %609 = vmatprep.subr.mxu1 %v792_v0 }
  0x51   :  { %575 = vmatpush3.msra.mxu0 %v88_v23  ;;  %610 = vmatpush3.msra.mxu1 %v182_v33 }
  0x52   :  { %577 = vmatmul.mubr.f32.vlgmr.msra.gmra.mxu0 %v87_v24  ;;  %614 = vmatprep.subr.mxu0 %v792_v0 }
  0x53   :  { %646 = vmatprep.mubr.msk.f32.mxu0 %vm793_vm0, %v792_v0  ;;  %649 = vmatprep.subr.mxu1 %v792_v0 }
  0x54   :  { %615 = vmatpush3.msra.mxu0 %v291_v34 }
  0x55   :  { %616 = vmatprep.subr.mxu0 %v792_v0 }
  0x56   :  { %617 = vmatpush3.msra.mxu0 %v290_v35 }
  0x57   :  { %618 = vmatprep.subr.mxu0 %v792_v0 }
  0x58   :  { %619 = vmatpush3.msra.mxu0 %v289_v36 }
  0x59   :  { %620 = vmatprep.subr.mxu0 %v792_v0 }
  0x5a   :  { %621 = vmatpush3.msra.mxu0 %v288_v37 }
  0x5b   :  { %622 = vmatprep.subr.mxu0 %v792_v0 }
  0x5c   :  { %623 = vmatpush3.msra.mxu0 %v287_v38 }
  0x5d   :  { %624 = vmatprep.subr.mxu0 %v792_v0 }
  0x5e   :  { %625 = vmatpush3.msra.mxu0 %v286_v39 }
  0x5f   :  { %626 = vmatprep.subr.mxu0 %v792_v0 }
  0x60   :  { %627 = vmatpush3.msra.mxu0 %v285_v40 }
  0x61   :  { %628 = vmatprep.subr.mxu0 %v792_v0 }
  0x62   :  { %629 = vmatpush3.msra.mxu0 %v284_v46 }
  0x63   :  { %630 = vmatprep.subr.mxu0 %v792_v0 }
  0x64   :  { %631 = vmatpush3.msra.mxu0 %v283_v47 }
  0x65   :  { %632 = vmatprep.subr.mxu0 %v792_v0 }
  0x66   :  { %633 = vmatpush3.msra.mxu0 %v282_v48 }
  0x67   :  { %634 = vmatprep.subr.mxu0 %v792_v0 }
  0x68   :  { %635 = vmatpush3.msra.mxu0 %v281_v49 }
  0x69   :  { %636 = vmatprep.subr.mxu0 %v792_v0 }
  0x6a   :  { %637 = vmatpush3.msra.mxu0 %v280_v50 }
  0x6b   :  { %638 = vmatprep.subr.mxu0 %v792_v0 }
  0x6c   :  { %639 = vmatpush3.msra.mxu0 %v279_v51 }
  0x6d   :  { %640 = vmatprep.subr.mxu0 %v792_v0 }
  0x6e   :  { %641 = vmatpush3.msra.mxu0 %v278_v52 }
  0x6f   :  { %642 = vmatprep.subr.mxu0 %v792_v0 }
  0x70   :  { %643 = vmatpush3.msra.mxu0 %v277_v53 }
  0x71   :  { %644 = vmatprep.subr.mxu0 %v792_v0 }
  0x72   :  { %645 = vmatpush3.msra.mxu0 %v276_v54 }
 0x112   :  { %v177_v42 = vpop.f32.mrf.mxu0 }
 0x113   :  { %v178_v43 = vadd.f32 %v472_v41, %v177_v42 }
 0x114   :  { %v578_v44 = vpop.f32.mrf.mxu0 }
 0x115   :  { %692 = vtanh.f32 %v178_v43 }
 0x122   :  { %v693_v45 = vpop.eup %692 }
 0x123   :  { %612 = vmatmul.mubr.f32.vlgmr.msra.gmra.mxu1 %v693_v45 }
 0x124   :  { %681 = vmatprep.mubr.msk.f32.mxu1 %vm793_vm0, %v792_v0  ;;  %650 = vmatpush3.msra.mxu1 %v385_v55 }
 0x125   :  { %651 = vmatprep.subr.mxu1 %v792_v0 }
 0x126   :  { %652 = vmatpush3.msra.mxu1 %v384_v56 }
 0x127   :  { %653 = vmatprep.subr.mxu1 %v792_v0 }
 0x128   :  { %654 = vmatpush3.msra.mxu1 %v383_v57 }
 0x129   :  { %655 = vmatprep.subr.mxu1 %v792_v0 }
 0x12a   :  { %656 = vmatpush3.msra.mxu1 %v382_v58 }
 0x12b   :  { %657 = vmatprep.subr.mxu1 %v792_v0 }
 0x12c   :  { %658 = vmatpush3.msra.mxu1 %v381_v59 }
 0x12d   :  { %659 = vmatprep.subr.mxu1 %v792_v0 }
 0x12e   :  { %660 = vmatpush3.msra.mxu1 %v380_v60 }
 0x12f   :  { %661 = vmatprep.subr.mxu1 %v792_v0 }
 0x130   :  { %662 = vmatpush3.msra.mxu1 %v379_v61 }
 0x131   :  { %663 = vmatprep.subr.mxu1 %v792_v0 }
 0x132   :  { %664 = vmatpush3.msra.mxu1 %v378_v4 }
 0x133   :  { %665 = vmatprep.subr.mxu1 %v792_v0 }
 0x134   :  { %666 = vmatpush3.msra.mxu1 %v377_v5 }
 0x135   :  { %667 = vmatprep.subr.mxu1 %v792_v0 }
 0x136   :  { %668 = vmatpush3.msra.mxu1 %v376_v6 }
 0x137   :  { %669 = vmatprep.subr.mxu1 %v792_v0 }
 0x138   :  { %670 = vmatpush3.msra.mxu1 %v375_v7 }
 0x139   :  { %671 = vmatprep.subr.mxu1 %v792_v0 }
 0x13a   :  { %672 = vmatpush3.msra.mxu1 %v374_v8 }
 0x13b   :  { %673 = vmatprep.subr.mxu1 %v792_v0 }
 0x13c   :  { %674 = vmatpush3.msra.mxu1 %v373_v9 }
 0x13d   :  { %675 = vmatprep.subr.mxu1 %v792_v0 }
 0x13e   :  { %676 = vmatpush3.msra.mxu1 %v372_v10 }
 0x13f   :  { %677 = vmatprep.subr.mxu1 %v792_v0 }
 0x140   :  { %678 = vmatpush3.msra.mxu1 %v371_v11 }
 0x141   :  { %679 = vmatprep.subr.mxu1 %v792_v0 }
 0x142   :  { %680 = vmatpush3.msra.mxu1 %v370_v12 }
 0x1e3   :  { %v271_v63 = vpop.f32.mrf.mxu1 }
 0x1e4   :  { %v272_v1 = vadd.f32 %v473_v62, %v271_v63 }
 0x1e5   :  { %v613_v2 = vpop.f32.mrf.mxu1 }
 0x1e6   :  { %694 = vtanh.f32 %v272_v1 }
 0x1f3   :  { %v695_v3 = vpop.eup %694 }
 0x1f4   :  { %647 = vmatmul.mubr.f32.vlgmr.msra.gmra.mxu0 %v695_v3 }
 0x2b4   :  { %v365_v14 = vpop.f32.mrf.mxu0 }
 0x2b5   :  { %v366_v15 = vadd.f32 %v474_v13, %v365_v14 }
 0x2b6   :  { %v648_v16 = vpop.f32.mrf.mxu0 }
 0x2b7   :  { %696 = vtanh.f32 %v366_v15 }
 0x2c4   :  { %v697_v17 = vpop.eup %696 }
 0x2c5   :  { %682 = vmatmul.mubr.f32.vlgmr.msra.gmra.mxu1 %v697_v17 }
 0x385   :  { %v459_v19 = vpop.f32.mrf.mxu1 }
 0x386   :  { %v460_v20 = vadd.f32 %v475_v18, %v459_v19 }
 0x387   :  { %v683_v21 = vpop.f32.mrf.mxu1 }
 0x388   :  { %698 = vtanh.f32 %v460_v20 }
 0x395   :  { %v699_v0 = vpop.eup %698 }
 0x396   :  { %464 = vst [vmem:[%s967_s9] sm:$0xff] %v699_v0 }
 0x397   :  { %469 = vsyncpa [#allocation3], 1 }
 0x398   :  { %470 = vsyncpa [#allocation5], 1 }
 0x399   :  { %471 = vsyncpa [#allocation8], 1 }

</bundles_post_ra>
